<compile_context>
chip_gen: v5e
topology: v5e:2x2
jax: 0.10.0
libtpu: 0.0.40
codegen_flags: <defaults>
</compile_context>

<pallas_src>
import jax
import jax.numpy as jnp
from jax import lax
from jax.experimental import pallas as pl
from jax.experimental.pallas import tpu as pltpu


def _nce_vsc_fc_kernel(vis_ref, text_ref, img_ref, cap_ref, temp_ref, out_ref):
    B = vis_ref.shape[0]
    NEG = jnp.float32(-1e30)

    vis = vis_ref[...]
    text = text_ref[...]
    img = img_ref[...]
    cap = cap_ref[...]

    # Learnable temperature: logit_scale = exp(temp), kept as a (1,1) vector value.
    scale = jnp.exp(temp_ref[...].astype(jnp.float32))                    # (1, 1)

    # One fused MXU matmul gives every similarity block we need:
    #   S[:B, :B] = v2t   = s * vis @ text.T
    #   S[:B, B:] = v2t_2 = s * vis @ cap.T
    #   S[B:, B:] = v2t_3 = s * img @ cap.T     (S[B:, :B] is unused)
    L = jnp.concatenate([vis, img], axis=0)                               # (2B, D)
    R = jnp.concatenate([text, cap], axis=0)                              # (2B, D)
    S = lax.dot_general(L, R, (((1,), (1,)), ((), ())),
                        preferred_element_type=jnp.float32) * scale       # (2B, 2B)

    # Sum of all positive (diagonal) logits, taken from S so the positives match the
    # logits used inside the logsumexps bit-for-bit.
    r2 = lax.broadcasted_iota(jnp.int32, (2 * B, 2 * B), 0)
    c2 = lax.broadcasted_iota(jnp.int32, (2 * B, 2 * B), 1)
    pos_mask = ((r2 < B) & ((c2 == r2) | (c2 == r2 + B))) | ((r2 >= B) & (c2 == r2))
    diag_sum = jnp.sum(jnp.where(pos_mask, S, 0.0))

    S_top = S[:B, :]                    # (B, 2B) = [v2t | v2t_2]
    S_bot = S[B:, :]                    # (B, 2B) = [ .  | v2t_3]

    r = lax.broadcasted_iota(jnp.int32, (B, 2 * B), 0)
    c = lax.broadcasted_iota(jnp.int32, (B, 2 * B), 1)
    bot_masked = jnp.where(c < B, NEG, S_bot)      # keep only the v2t_3 block

    # Row-direction CE logits stacked along sublanes -> one logsumexp pass:
    #   rows [0,B)   : cat([v2t_pos,   v2t_neg, v2t_neg_2]) == S_top minus v2t_2 diag
    #   rows [B,2B)  : cat([v2t_pos_2, v2t_neg, v2t_neg_2]) == S_top minus v2t   diag
    #   rows [2B,3B) : full rows of v2t_3
    row_cat = jnp.concatenate([
        jnp.where(c == r + B, NEG, S_top),
        jnp.where(c == r, NEG, S_top),
        bot_masked,
    ], axis=0)                                                             # (3B, 2B)
    row_m = jnp.max(row_cat, axis=1, keepdims=True)                        # (3B, 1)
    row_lse = row_m + jnp.log(jnp.sum(jnp.exp(row_cat - row_m),
                                      axis=1, keepdims=True))              # (3B, 1)
    row_lse_sum = jnp.sum(row_lse)

    # Column-direction CEs (t2v, t2v_2, t2v_3): column logsumexps.
    #   columns of S_top cover t2v and t2v_2 with ONE sublane reduction;
    #   columns of bot_masked cover t2v_3 (left half is -1e30 filler, dropped below).
    top_m = jnp.max(S_top, axis=0, keepdims=True)                          # (1, 2B)
    top_lse = top_m + jnp.log(jnp.sum(jnp.exp(S_top - top_m),
                                      axis=0, keepdims=True))
    bot_m = jnp.max(bot_masked, axis=0, keepdims=True)
    bot_lse = bot_m + jnp.log(jnp.sum(jnp.exp(bot_masked - bot_m),
                                      axis=0, keepdims=True))              # (1, 2B)
    c_cols = lax.broadcasted_iota(jnp.int32, (1, 2 * B), 1)
    col_lse_sum = jnp.sum(top_lse) + jnp.sum(jnp.where(c_cols >= B, bot_lse, 0.0))

    # Each of the 6 cross-entropies is a mean over B rows; each positive logit is
    # subtracted exactly twice (once in its row-direction term, once column-direction).
    loss = (row_lse_sum + col_lse_sum - 2.0 * diag_sum) / jnp.float32(B)
    out_ref[...] = jnp.reshape(loss, (1, 1))


def nce_learnable_temp_loss_vsc_fc(vis_feat, text_feat, img_feat, cap_feat, temp):
    """Pallas implementation of NCELearnableTempLoss_vsc_fc.forward."""
    assert text_feat.shape[0] == cap_feat.shape[0]
    assert vis_feat.shape == text_feat.shape == img_feat.shape == cap_feat.shape
    temp_2d = jnp.asarray(temp, dtype=jnp.float32).reshape(1, 1)
    out = pl.pallas_call(
        _nce_vsc_fc_kernel,
        out_shape=jax.ShapeDtypeStruct((1, 1), jnp.float32),
        in_specs=[pl.BlockSpec(memory_space=pltpu.MemorySpace.VMEM)
                  for _ in range(5)],
        out_specs=pl.BlockSpec(memory_space=pltpu.MemorySpace.VMEM),
    )(vis_feat, text_feat, img_feat, cap_feat, temp_2d)
    return out[0, 0]


# ----------------------------- pure-JAX reference -----------------------------

def _remove_diag(M):
    """Row-major off-diagonal entries, matching torch's M[~eye].reshape(B, B-1)."""
    B = M.shape[0]
    idx = jnp.arange(B)[:, None]
    cols = jnp.arange(B - 1)[None, :]
    gather = cols + (cols >= idx)
    return jnp.take_along_axis(M, gather, axis=1)


def _ce(logits, labels):
    lse = jax.scipy.special.logsumexp(logits, axis=-1)
    pos = jnp.take_along_axis(logits, labels[:, None], axis=1)[:, 0]
    return jnp.mean(lse - pos)


def nce_loss_ref(vis_feat, text_feat, img_feat, cap_feat, temp):
    """Mirror of the PyTorch forward, for verification."""
    s = jnp.exp(temp)
    v2t = vis_feat @ text_feat.T * s
    t2v = v2t.T
    v2t_2 = vis_feat @ cap_feat.T * s
    t2v_2 = v2t_2.T
    B = v2t.shape[0]
    ar = jnp.arange(B)
    zeros = jnp.zeros(B, dtype=jnp.int32)

    v2t_pos = jnp.diag(v2t)[:, None]
    v2t_neg = _remove_diag(v2t)
    v2t_pos_2 = jnp.diag(v2t_2)[:, None]
    v2t_neg_2 = _remove_diag(v2t_2)
    v2t_cat = jnp.concatenate([v2t_pos, v2t_neg, v2t_neg_2], axis=1)
    v2t_2_cat = jnp.concatenate([v2t_pos_2, v2t_neg, v2t_neg_2], axis=1)

    v2t_3 = img_feat @ cap_feat.T * s
    t2v_3 = v2t_3.T

    return (_ce(t2v, ar) + _ce(t2v_2, ar) + _ce(v2t_cat, zeros)
            + _ce(v2t_2_cat, zeros) + _ce(t2v_3, ar) + _ce(v2t_3, ar))


if __name__ == "__main__":
    B, D = 8, 32
    key = jax.random.PRNGKey(0)
    kv, kt, ki, kc = jax.random.split(key, 4)

    def unit_feat(k):
        x = jax.random.normal(k, (B, D), dtype=jnp.float32)
        return x / jnp.linalg.norm(x, axis=-1, keepdims=True)

    vis_feat = unit_feat(kv)
    text_feat = unit_feat(kt)
    img_feat = unit_feat(ki)
    cap_feat = unit_feat(kc)
    # Learnable temperature parameter (CLIP-style init: logit_scale = 1/0.07).
    temp = jnp.asarray(jnp.log(1.0 / 0.07), dtype=jnp.float32)

    loss = jax.block_until_ready(
        nce_learnable_temp_loss_vsc_fc(vis_feat, text_feat, img_feat, cap_feat, temp))
    ref = nce_loss_ref(vis_feat, text_feat, img_feat, cap_feat, temp)
    assert jnp.allclose(loss, ref, rtol=1e-4, atol=1e-4), (loss, ref)
    print("KERNEL_OK")
</pallas_src>

<mosaic_0001>
module attributes {stable_mosaic.version = 11 : i64} {
  func.func @_nce_vsc_fc_kernel(%arg0: memref<8x32xf32, #tpu.memory_space<vmem>>, %arg1: memref<8x32xf32, #tpu.memory_space<vmem>>, %arg2: memref<8x32xf32, #tpu.memory_space<vmem>>, %arg3: memref<8x32xf32, #tpu.memory_space<vmem>>, %arg4: memref<1x1xf32, #tpu.memory_space<vmem>>, %arg5: memref<1x1xf32, #tpu.memory_space<vmem>>) attributes {dimension_semantics = [], scalar_prefetch = 0 : i64, scratch_operands = 0 : i64, tpu.core_type = #tpu.core_type<tc>} {
    %c0 = arith.constant 0 : index
    %c0_0 = arith.constant 0 : index
    %0 = vector.load %arg0[%c0, %c0_0] : memref<8x32xf32, #tpu.memory_space<vmem>>, vector<8x32xf32>
    %c0_1 = arith.constant 0 : index
    %c0_2 = arith.constant 0 : index
    %1 = vector.load %arg1[%c0_1, %c0_2] : memref<8x32xf32, #tpu.memory_space<vmem>>, vector<8x32xf32>
    %c0_3 = arith.constant 0 : index
    %c0_4 = arith.constant 0 : index
    %2 = vector.load %arg2[%c0_3, %c0_4] : memref<8x32xf32, #tpu.memory_space<vmem>>, vector<8x32xf32>
    %c0_5 = arith.constant 0 : index
    %c0_6 = arith.constant 0 : index
    %3 = vector.load %arg3[%c0_5, %c0_6] : memref<8x32xf32, #tpu.memory_space<vmem>>, vector<8x32xf32>
    %c0_7 = arith.constant 0 : index
    %c0_8 = arith.constant 0 : index
    %4 = vector.load %arg4[%c0_7, %c0_8] : memref<1x1xf32, #tpu.memory_space<vmem>>, vector<1x1xf32>
    %5 = math.exp %4 : vector<1x1xf32>
    %6 = tpu.concatenate %0, %2 in 0 : vector<8x32xf32>, vector<8x32xf32> -> vector<16x32xf32>
    %7 = tpu.concatenate %1, %3 in 0 : vector<8x32xf32>, vector<8x32xf32> -> vector<16x32xf32>
    %cst = arith.constant dense<0.000000e+00> : vector<16x16xf32>
    %8 = tpu.matmul %6, %7, %cst {dimension_numbers = #tpu.dot_dimension_numbers<[1], [1], [0], [0], [0, 0, 1, 0], [], []>} : vector<16x32xf32>, vector<16x32xf32>, vector<16x16xf32> -> vector<16x16xf32>
    %9 = vector.broadcast %5 : vector<1x1xf32> to vector<16x16xf32>
    %10 = arith.mulf %8, %9 : vector<16x16xf32>
    %11 = tpu.iota {dimensions = array<i32: 0>} : vector<16x16xi32>
    %12 = tpu.iota {dimensions = array<i32: 1>} : vector<16x16xi32>
    %c8_i32 = arith.constant 8 : i32
    %13 = vector.broadcast %c8_i32 : i32 to vector<16x16xi32>
    %14 = arith.cmpi slt, %11, %13 : vector<16x16xi32>
    %15 = arith.cmpi eq, %12, %11 : vector<16x16xi32>
    %c8_i32_9 = arith.constant 8 : i32
    %16 = vector.broadcast %c8_i32_9 : i32 to vector<16x16xi32>
    %17 = arith.addi %11, %16 : vector<16x16xi32>
    %18 = arith.cmpi eq, %12, %17 : vector<16x16xi32>
    %19 = arith.ori %15, %18 : vector<16x16xi1>
    %20 = arith.andi %14, %19 : vector<16x16xi1>
    %c8_i32_10 = arith.constant 8 : i32
    %21 = vector.broadcast %c8_i32_10 : i32 to vector<16x16xi32>
    %22 = arith.cmpi sge, %11, %21 : vector<16x16xi32>
    %23 = arith.cmpi eq, %12, %11 : vector<16x16xi32>
    %24 = arith.andi %22, %23 : vector<16x16xi1>
    %25 = arith.ori %20, %24 : vector<16x16xi1>
    %cst_11 = arith.constant 0.000000e+00 : f32
    %26 = vector.broadcast %cst_11 : f32 to vector<16x16xf32>
    %27 = arith.select %25, %10, %26 : vector<16x16xi1>, vector<16x16xf32>
    %28 = vector.shape_cast %27 : vector<16x16xf32> to vector<1x16x16xf32>
    %cst_12 = arith.constant dense<0.000000e+00> : vector<1xf32>
    %29 = vector.multi_reduction <add>, %28, %cst_12 [1, 2] : vector<1x16x16xf32> to vector<1xf32>
    %30 = vector.shape_cast %29 : vector<1xf32> to vector<1x1x1xf32>
    %31 = vector.extract %30[0, 0, 0] : f32 from vector<1x1x1xf32>
    %32 = vector.extract_strided_slice %10 {offsets = [0, 0], sizes = [8, 16], strides = [1, 1]} : vector<16x16xf32> to vector<8x16xf32>
    %33 = vector.extract_strided_slice %10 {offsets = [8, 0], sizes = [8, 16], strides = [1, 1]} : vector<16x16xf32> to vector<8x16xf32>
    %34 = tpu.iota {dimensions = array<i32: 0>} : vector<8x16xi32>
    %35 = tpu.iota {dimensions = array<i32: 1>} : vector<8x16xi32>
    %c8_i32_13 = arith.constant 8 : i32
    %36 = vector.broadcast %c8_i32_13 : i32 to vector<8x16xi32>
    %37 = arith.cmpi slt, %35, %36 : vector<8x16xi32>
    %cst_14 = arith.constant -1.000000e+30 : f32
    %38 = vector.broadcast %cst_14 : f32 to vector<8x16xf32>
    %39 = arith.select %37, %38, %33 : vector<8x16xi1>, vector<8x16xf32>
    %c8_i32_15 = arith.constant 8 : i32
    %40 = vector.broadcast %c8_i32_15 : i32 to vector<8x16xi32>
    %41 = arith.addi %34, %40 : vector<8x16xi32>
    %42 = arith.cmpi eq, %35, %41 : vector<8x16xi32>
    %cst_16 = arith.constant -1.000000e+30 : f32
    %43 = vector.broadcast %cst_16 : f32 to vector<8x16xf32>
    %44 = arith.select %42, %43, %32 : vector<8x16xi1>, vector<8x16xf32>
    %45 = arith.cmpi eq, %35, %34 : vector<8x16xi32>
    %cst_17 = arith.constant -1.000000e+30 : f32
    %46 = vector.broadcast %cst_17 : f32 to vector<8x16xf32>
    %47 = arith.select %45, %46, %32 : vector<8x16xi1>, vector<8x16xf32>
    %48 = tpu.concatenate %44, %47, %39 in 0 : vector<8x16xf32>, vector<8x16xf32>, vector<8x16xf32> -> vector<24x16xf32>
    %cst_18 = arith.constant dense<0xFF800000> : vector<24xf32>
    %49 = vector.multi_reduction <maximumf>, %48, %cst_18 [1] : vector<24x16xf32> to vector<24xf32>
    %50 = vector.shape_cast %49 : vector<24xf32> to vector<24x1xf32>
    %51 = vector.broadcast %50 : vector<24x1xf32> to vector<24x16xf32>
    %52 = arith.subf %48, %51 : vector<24x16xf32>
    %53 = math.exp %52 : vector<24x16xf32>
    %cst_19 = arith.constant dense<0.000000e+00> : vector<24xf32>
    %54 = vector.multi_reduction <add>, %53, %cst_19 [1] : vector<24x16xf32> to vector<24xf32>
    %55 = vector.shape_cast %54 : vector<24xf32> to vector<24x1xf32>
    %56 = math.log %55 : vector<24x1xf32>
    %57 = arith.addf %50, %56 : vector<24x1xf32>
    %58 = vector.shape_cast %57 : vector<24x1xf32> to vector<1x24x1xf32>
    %cst_20 = arith.constant dense<0.000000e+00> : vector<1xf32>
    %59 = vector.multi_reduction <add>, %58, %cst_20 [1, 2] : vector<1x24x1xf32> to vector<1xf32>
    %60 = vector.shape_cast %59 : vector<1xf32> to vector<1x1x1xf32>
    %61 = vector.extract %60[0, 0, 0] : f32 from vector<1x1x1xf32>
    %cst_21 = arith.constant dense<0xFF800000> : vector<16xf32>
    %62 = vector.multi_reduction <maximumf>, %32, %cst_21 [0] : vector<8x16xf32> to vector<16xf32>
    %63 = vector.shape_cast %62 : vector<16xf32> to vector<1x16xf32>
    %64 = vector.broadcast %63 : vector<1x16xf32> to vector<8x16xf32>
    %65 = arith.subf %32, %64 : vector<8x16xf32>
    %66 = math.exp %65 : vector<8x16xf32>
    %cst_22 = arith.constant dense<0.000000e+00> : vector<16xf32>
    %67 = vector.multi_reduction <add>, %66, %cst_22 [0] : vector<8x16xf32> to vector<16xf32>
    %68 = vector.shape_cast %67 : vector<16xf32> to vector<1x16xf32>
    %69 = math.log %68 : vector<1x16xf32>
    %70 = arith.addf %63, %69 : vector<1x16xf32>
    %cst_23 = arith.constant dense<0xFF800000> : vector<16xf32>
    %71 = vector.multi_reduction <maximumf>, %39, %cst_23 [0] : vector<8x16xf32> to vector<16xf32>
    %72 = vector.shape_cast %71 : vector<16xf32> to vector<1x16xf32>
    %73 = vector.broadcast %72 : vector<1x16xf32> to vector<8x16xf32>
    %74 = arith.subf %39, %73 : vector<8x16xf32>
    %75 = math.exp %74 : vector<8x16xf32>
    %cst_24 = arith.constant dense<0.000000e+00> : vector<16xf32>
    %76 = vector.multi_reduction <add>, %75, %cst_24 [0] : vector<8x16xf32> to vector<16xf32>
    %77 = vector.shape_cast %76 : vector<16xf32> to vector<1x16xf32>
    %78 = math.log %77 : vector<1x16xf32>
    %79 = arith.addf %72, %78 : vector<1x16xf32>
    %80 = tpu.iota {dimensions = array<i32: 1>} : vector<1x16xi32>
    %81 = vector.shape_cast %70 : vector<1x16xf32> to vector<1x1x16xf32>
    %cst_25 = arith.constant dense<0.000000e+00> : vector<1xf32>
    %82 = vector.multi_reduction <add>, %81, %cst_25 [1, 2] : vector<1x1x16xf32> to vector<1xf32>
    %83 = vector.shape_cast %82 : vector<1xf32> to vector<1x1x1xf32>
    %84 = vector.extract %83[0, 0, 0] : f32 from vector<1x1x1xf32>
    %c8_i32_26 = arith.constant 8 : i32
    %85 = vector.broadcast %c8_i32_26 : i32 to vector<1x16xi32>
    %86 = arith.cmpi sge, %80, %85 : vector<1x16xi32>
    %cst_27 = arith.constant 0.000000e+00 : f32
    %87 = vector.broadcast %cst_27 : f32 to vector<1x16xf32>
    %88 = arith.select %86, %79, %87 : vector<1x16xi1>, vector<1x16xf32>
    %89 = vector.shape_cast %88 : vector<1x16xf32> to vector<1x1x16xf32>
    %cst_28 = arith.constant dense<0.000000e+00> : vector<1xf32>
    %90 = vector.multi_reduction <add>, %89, %cst_28 [1, 2] : vector<1x1x16xf32> to vector<1xf32>
    %91 = vector.shape_cast %90 : vector<1xf32> to vector<1x1x1xf32>
    %92 = vector.extract %91[0, 0, 0] : f32 from vector<1x1x1xf32>
    %93 = arith.addf %84, %92 : f32
    %94 = arith.addf %61, %93 : f32
    %cst_29 = arith.constant 2.000000e+00 : f32
    %95 = arith.mulf %cst_29, %31 : f32
    %96 = arith.subf %94, %95 : f32
    %cst_30 = arith.constant 8.000000e+00 : f32
    %97 = arith.divf %96, %cst_30 : f32
    %98 = vector.broadcast %97 : f32 to vector<1x1xf32>
    %c0_31 = arith.constant 0 : index
    %c0_32 = arith.constant 0 : index
    %99 = vector.load %arg5[%c0_31, %c0_32] : memref<1x1xf32, #tpu.memory_space<vmem>>, vector<1x1xf32>
    tpu.vector_store %arg5[%c0_31, %c0_32], %98 {strides = array<i32>} : memref<1x1xf32, #tpu.memory_space<vmem>>, vector<1x1xf32>,
    return
  }
}

</mosaic_0001>

<bundles_post_ra>
// kernel: tpu_custom_call.1
= control target key start
LH: loop header
LB: loop body
LE: loop exit
PB: predicated region body
PF: predicated region fallthrough
CT: control target
= control target key end

     0   :  { %s578_s0 = inlined_call_operand.hbm [shape: f32[8,32], index: 0, kind: input, shape index: {}]   ;;  %s579_s1 = inlined_call_operand.hbm [shape: f32[8,32], index: 1, kind: input, shape index: {}]   ;;  %s580_s2 = inlined_call_operand.hbm [shape: f32[8,32], index: 2, kind: input, shape index: {}]   ;;  %s581_s3 = inlined_call_operand.hbm [shape: f32[8,32], index: 3, kind: input, shape index: {}]   ;;  %s582_s4 = inlined_call_operand.<no memory space> [shape: f32[1,1], index: 4, kind: input, shape index: {}]   ;;  %s583_s5 = inlined_call_operand.hbm [shape: f32[1,1], index: 5, kind: output, shape index: {}]  }
   0x1   :  { %v10_v0 = vstv %s582_s4 }
   0x2   :  { %11 = vst [vmem:[#allocation2] sm:$0x1] %v10_v0 }
   0x3   :  { %12 = vsyncpa [#allocation4], 0 }
   0x4   :  { %13 = vsyncpa [#allocation7], 0 }
   0x5   :  { %14 = vsyncpa [#allocation10], 0  ;;  %s32_s22 = sshll.u32 %s579_s1, 4  ;;  %s33_s22 = int_to_ptr.hbm [resolvable:$true] %s32_s22 }
   0x6   :  { %15 = vsyncpa [#allocation5], 0  ;;  %s493_s23 = smov [#allocation6]   ;;  %s21_s27 = sshll.u32 %s578_s0, 4  ;;  %s22_s27 = int_to_ptr.hbm [resolvable:$true] %s21_s27 }
   0x7   :  { %s34_s24 = sshll.u32 %s493_s23, 4  ;;  %s494_s4 = smov [#allocation3]   ;;  %s35_s24 = int_to_ptr.vmem [resolvable:$true] %s34_s24 }
   0x8   :  { %37 = dma.hbm_to_vmem [thread:$0]  %s33_s22, 128, %s35_s24, [#allocation7]  }
   0x9   :  { %s23_s28 = sshll.u32 %s494_s4, 4  ;;  %s43_s6 = sshll.u32 %s580_s2, 4  ;;  %s24_s28 = int_to_ptr.vmem [resolvable:$true] %s23_s28  ;;  %s44_s6 = int_to_ptr.hbm [resolvable:$true] %s43_s6 }
   0xa   :  { %26 = dma.hbm_to_vmem [thread:$0]  %s22_s27, 128, %s24_s28, [#allocation4]  }
   0xb   :  { %s54_s8 = sshll.u32 %s581_s3, 4  ;;  %s495_s9 = smov [#allocation8]   ;;  %s55_s8 = int_to_ptr.hbm [resolvable:$true] %s54_s8 }
   0xc   :  { %s45_s10 = sshll.u32 %s495_s9, 4  ;;  %s496_s0 = smov [#allocation9]   ;;  %s46_s10 = int_to_ptr.vmem [resolvable:$true] %s45_s10 }
   0xd   :  { %48 = dma.hbm_to_vmem [thread:$0]  %s44_s6, 128, %s46_s10, [#allocation7]  }
   0xe   :  { %s56_s11 = sshll.u32 %s496_s0, 4  ;;  %s57_s11 = int_to_ptr.vmem [resolvable:$true] %s56_s11 }
   0xf   :  { %59 = dma.hbm_to_vmem [thread:$0]  %s55_s8, 128, %s57_s11, [#allocation10]  }
  0x10   :  { %485 = dma.done.wait [#allocation4], 128  }
  0x11   :  { %486 = vsyncadd [#allocation4], 4294967168 }
  0x12   :  { %487 = dma.done.wait [#allocation7], 256  }
  0x13   :  { %488 = vsyncadd [#allocation7], 4294967040 }
  0x14   :  { %489 = dma.done.wait [#allocation10], 128  }
  0x15   :  { %490 = vsyncadd [#allocation10], 4294967168  ;;  %v497_v1 = vmov 0   ;;  %vm85_vm0 = vcmask 261120   ;;  %v81_v2 = vld [vmem:[#allocation9] sm:$0xff]  ;;  %v79_v4 = vld [vmem:[#allocation6] sm:$0xff]  ;;  %v129_v10 = vlaneseq }
  0x16   :  { %340 = vset.pattern.permute.xlu0 %v497_v1  ;;  %317 = vmatpush.xpose.msk.msra.mxu0 %vm85_vm0, %v81_v2  ;;  %v82_v3 = vld [vmem:[#allocation2] sm:$0x1]  ;;  %v78_v6 = vld [vmem:[#allocation3] sm:$0xff]  ;;  %v80_v7 = vld [vmem:[#allocation8] sm:$0xff]  ;;  %vm152_vm5 = vcmask 130048   ;;  %vm259_vm7 = vcmask 122880  }
  0x17   :  { %321 = vmatpush.xpose.msk.msra.mxu1 %vm85_vm0, %v81_v2  ;;  %v83_v5 = vmul.f32 1.442695, %v82_v3  ;;  %v130_v11 = vshrl.u32 %v129_v10, 7  ;;  %v133_v13 = vand.u32 127, %v129_v10  ;;  %vm205_vm8 = vcmask 7168   ;;  %s499_s18 = smov [#allocation11]  }
  0x18   :  { %s303_s19 = sshll.u32 %s499_s18, 4  ;;  %s305_s23 = sshll.u32 %s583_s5, 4  ;;  %vm296_vm10 = vcmask 0   ;;  %s304_s19 = int_to_ptr.vmem [resolvable:$true] %s303_s19  ;;  %s306_s23 = int_to_ptr.hbm [resolvable:$true] %s305_s23 }
  0x19   :  { %341 = vpow2.f32 %v83_v5  ;;  %v131_v12 = vadd.s32 8, %v130_v11  ;;  %vm136_vm2 = vcmp.eq.s32.totalorder %v133_v13, %v130_v11  ;;  %vm165_vm4 = vcmp.lt.s32.totalorder %v133_v13, 8 }
  0x1a   :  { %318 = vmatpush.xpose.msk.msra.mxu0 %vm85_vm0, %v79_v4  ;;  %vm270_vm6 = vcmp.ge.s32.totalorder %v133_v13, 8 }
  0x1b   :  { %322 = vmatpush.xpose.msk.msra.mxu1 %vm85_vm0, %v79_v4  ;;  %vm137_vm1 = vcmp.eq.s32.totalorder %v133_v13, %v131_v12 }
  0x1c   :  { %vm545_vm3 = vmor %vm136_vm2, %vm137_vm1 }
  0x1d   :  { %319 = vmatmul.msk.f32.vlgmr.msra.gmra.mxu0 %vm85_vm0, %v78_v6 }
  0x1e   :  { %320 = vmatmul.msk.f32.vlgmr.msra.gmra.mxu1 %vm85_vm0, %v80_v7 }
  0x1f   :  { %v342_v8 = vpop.eup %341 }
  0x20   :  { %v122_v9 = vperm.slane %v342_v8, 0 }
  0x22   :  { %124 = vperm.xlu0 %340, %v122_v9  }
  0x94   :  { %v125_v15 = vpop.permute.xlu0 %124 }
  0x9a   :  { %v115_v16 = vpop.f32.mrf.mxu0 }
  0x9b   :  { %v118_v17 = vpop.f32.mrf.mxu1  ;;  %v127_v18 = vmul.f32 %v125_v15, %v115_v16 }
  0x9c   :  { %v128_v19 = vmul.f32 %v125_v15, %v118_v17 }
  0x9d   :  { %v168_v22 = vsel %vm136_vm2, -1e+30, %v127_v18  ;;  %v150_v23 = vsel %vm545_vm3, %v127_v18, 0.0  ;;  %v167_v25 = vsel %vm137_vm1, -1e+30, %v127_v18  ;;  %v220_v52 = vsel %vm152_vm5, %v127_v18, -inf }
  0x9e   :  { %v151_v20 = vsel %vm137_vm1, %v128_v19, 0.0  ;;  %v549_v21 = vsel %vm165_vm4, -1e+30, %v128_v19  ;;  %v172_v24 = vsel %vm152_vm5, %v168_v22, -inf  ;;  %v153_v27 = vsel %vm152_vm5, %v150_v23, 0.0 }
  0x9f   :  { %v175_v26 = vsel %vm152_vm5, %v549_v21, -inf  ;;  %173 = vmax.xlane.f32.xlu1 %v172_v24  ;;  %v169_v28 = vsel %vm152_vm5, %v167_v25, -inf  ;;  %v154_v30 = vsel %vm152_vm5, %v151_v20, 0.0  ;;  %v221_v53 = vrot.slane %v220_v52, 4 }
  0xa0   :  { %v240_v29 = vrot.slane %v175_v26, 4  ;;  %170 = vmax.xlane.f32.xlu0 %v169_v28  ;;  %v559_v31 = vadd.f32 %v154_v30, %v153_v27 }
  0xa1   :  { %v222_v54 = vmax.f32 %v220_v52, %v221_v53 }
  0xa2   :  { %v241_v32 = vmax.f32 %v175_v26, %v240_v29 }
  0xa3   :  { %v223_v55 = vrot.slane %v222_v54, 2 }
  0xa4   :  { %v242_v33 = vrot.slane %v241_v32, 2 }
  0xa5   :  { %v224_v56 = vmax.f32 %v222_v54, %v223_v55 }
  0xa6   :  { %v243_v34 = vmax.f32 %v241_v32, %v242_v33 }
  0xa7   :  { %176 = vmax.xlane.f32.xlu1 %v175_v26  ;;  %v225_v57 = vrot.slane %v224_v56, 1 }
  0xa8   :  { %v244_v35 = vrot.slane %v243_v34, 1 }
  0xa9   :  { %v226_v58 = vmax.f32 %v224_v56, %v225_v57 }
  0xaa   :  { %v245_v36 = vmax.f32 %v243_v34, %v244_v35 }
  0xab   :  { %v227_v59 = vsub.f32 %v127_v18, %v226_v58 }
  0xac   :  { %v246_v37 = vsub.f32 %v549_v21, %v245_v36 }
  0xad   :  { %v228_v60 = vmul.f32 1.442695, %v227_v59 }
  0xae   :  { %v247_v38 = vmul.f32 1.442695, %v246_v37 }
  0xb0   :  { %343 = vpow2.f32 %v247_v38 }
  0xb6   :  { %v344_v39 = vpop.eup %343 }
  0xb7   :  { %v249_v40 = vsel %vm152_vm5, %v344_v39, 0.0 }
  0xb8   :  { %v250_v41 = vrot.slane %v249_v40, 4 }
  0xba   :  { %v251_v42 = vadd.f32 %v250_v41, %v249_v40 }
  0xbc   :  { %v252_v43 = vrot.slane %v251_v42, 2 }
  0xbe   :  { %v253_v44 = vadd.f32 %v252_v43, %v251_v42 }
  0xc0   :  { %v254_v45 = vrot.slane %v253_v44, 1 }
  0xc2   :  { %v255_v46 = vadd.f32 %v254_v45, %v253_v44 }
  0xc4   :  { %345 = vlog2.f32 %v255_v46 }
  0xc5   :  { %347 = vpow2.f32 %v228_v60 }
  0xca   :  { %v346_v47 = vpop.eup %345 }
  0xcb   :  { %v257_v48 = vmul.f32 0.6931472, %v346_v47  ;;  %v348_v61 = vpop.eup %347 }
  0xcc   :  { %v230_v62 = vsel %vm152_vm5, %v348_v61, 0.0 }
  0xcd   :  { %v258_v49 = vadd.f32 %v257_v48, %v245_v36  ;;  %v231_v63 = vrot.slane %v230_v62, 4 }
  0xcf   :  { %v271_v50 = vsel %vm270_vm6, %v258_v49, 0.0  ;;  %v232_v1 = vadd.f32 %v231_v63, %v230_v62 }
  0xd0   :  { %v564_v51 = vsel %vm259_vm7, %v271_v50, 0.0  ;;  %v498_v50 = vmov 8.0  }
  0xd1   :  { %v233_v6 = vrot.slane %v232_v1, 2 }
  0xd3   :  { %v234_v9 = vadd.f32 %v233_v6, %v232_v1 }
  0xd5   :  { %v235_v13 = vrot.slane %v234_v9, 1 }
  0xd7   :  { %v236_v15 = vadd.f32 %v235_v13, %v234_v9 }
 0x112   :  { %v174_v0 = vpop.xlane.xlu1 %173 }
 0x113   :  { %v171_v2 = vpop.xlane.xlu0 %170  ;;  %v179_v4 = vsub.f32 %v168_v22, %v174_v0 }
 0x114   :  { %v178_v3 = vsub.f32 %v167_v25, %v171_v2 }
 0x115   :  { %v183_v7 = vmul.f32 1.442695, %v179_v4 }
 0x116   :  { %v181_v5 = vmul.f32 1.442695, %v178_v3 }
 0x118   :  { %349 = vpow2.f32 %v181_v5 }
 0x119   :  { %351 = vpow2.f32 %v183_v7 }
 0x11a   :  { %v177_v8 = vpop.xlane.xlu1 %176 }
 0x11b   :  { %v180_v10 = vsub.f32 %v549_v21, %v177_v8 }
 0x11d   :  { %v185_v11 = vmul.f32 1.442695, %v180_v10 }
 0x11e   :  { %v350_v12 = vpop.eup %349 }
 0x11f   :  { %353 = vpow2.f32 %v185_v11  ;;  %v187_v14 = vsel %vm152_vm5, %v350_v12, 0.0  ;;  %v352_v16 = vpop.eup %351 }
 0x120   :  { %188 = vadd.xlane.f32.xlu2 %v187_v14  ;;  %355 = vlog2.f32 %v236_v15  ;;  %v190_v19 = vsel %vm152_vm5, %v352_v16, 0.0 }
 0x125   :  { %v354_v17 = vpop.eup %353 }
 0x126   :  { %v193_v18 = vsel %vm152_vm5, %v354_v17, 0.0  ;;  %v356_v20 = vpop.eup %355 }
 0x127   :  { %194 = vadd.xlane.f32.xlu1 %v193_v18  ;;  %v238_v21 = vmul.f32 0.6931472, %v356_v20 }
 0x128   :  { %191 = vadd.xlane.f32.xlu2 %v190_v19 }
 0x129   :  { %v239_v22 = vadd.f32 %v238_v21, %v226_v58 }
 0x12b   :  { %v260_v23 = vsel %vm259_vm7, %v239_v22, 0.0 }
 0x130   :  { %156 = vadd.xlane.f32.xlu2 %v559_v31 }
 0x138   :  { %261 = vadd.xlane.f32.xlu2 %v260_v23 }
 0x193   :  { %v189_v24 = vpop.xlane.xlu2 %188 }
 0x194   :  { %357 = vlog2.f32 %v189_v24 }
 0x19a   :  { %v195_v25 = vpop.xlane.xlu1 %194  ;;  %v358_v27 = vpop.eup %357 }
 0x19b   :  { %359 = vlog2.f32 %v195_v25  ;;  %v192_v26 = vpop.xlane.xlu2 %191  ;;  %v197_v28 = vmul.f32 0.6931472, %v358_v27 }
 0x19c   :  { %361 = vlog2.f32 %v192_v26 }
 0x19d   :  { %v202_v33 = vadd.f32 %v197_v28, %v171_v2  ;;  %363 = vrcp.f32 %v498_v50 }
 0x19f   :  { %v206_v39 = vsel %vm205_vm8, %v202_v33, 0.0 }
 0x1a1   :  { %v360_v29 = vpop.eup %359 }
 0x1a2   :  { %v362_v30 = vpop.eup %361  ;;  %v201_v32 = vmul.f32 0.6931472, %v360_v29 }
 0x1a3   :  { %v199_v34 = vmul.f32 0.6931472, %v362_v30  ;;  %v157_v35 = vpop.xlane.xlu2 %156  ;;  %v364_v53 = vpop.eup %363 }
 0x1a4   :  { %v158_v36 = vrot.slane %v157_v35, 4  ;;  %v204_v31 = vadd.f32 %v201_v32, %v177_v8  ;;  %v287_v58 = vmul.f32 8.0, %v364_v53  ;;  %vm291_vm9 = vweird.f32 %v364_v53 }
 0x1a5   :  { %v203_v37 = vadd.f32 %v199_v34, %v174_v0 }
 0x1a6   :  { %v159_v38 = vadd.f32 %v158_v36, %v157_v35  ;;  %v209_v43 = vsel %vm205_vm8, %v204_v31, 0.0  ;;  %v288_v62 = vsub.f32 1.0, %v287_v58 }
 0x1a7   :  { %v207_v40 = vsel %vm205_vm8, %v203_v37, 0.0 }
 0x1a8   :  { %v160_v41 = vrot.slane %v159_v38, 2  ;;  %v208_v42 = vadd.f32 %v207_v40, %v206_v39  ;;  %v289_v4 = vmul.f32 %v364_v53, %v288_v62 }
 0x1aa   :  { %v210_v44 = vadd.f32 %v209_v43, %v208_v42  ;;  %v161_v45 = vadd.f32 %v160_v41, %v159_v38  ;;  %v290_v8 = vadd.f32 %v364_v53, %v289_v4 }
 0x1ab   :  { %v262_v48 = vpop.xlane.xlu2 %261 }
 0x1ac   :  { %211 = vadd.xlane.f32.xlu1 %v210_v44  ;;  %v162_v46 = vrot.slane %v161_v45, 1  ;;  %v263_v49 = vrot.slane %v262_v48, 4  ;;  %v292_v11 = vsel %vm291_vm9, %v364_v53, %v290_v8 }
 0x1ae   :  { %v163_v47 = vadd.f32 %v162_v46, %v161_v45  ;;  %v264_v52 = vadd.f32 %v263_v49, %v262_v48 }
 0x1b0   :  { %323 = vpush %v163_v47  ;;  %v265_v54 = vrot.slane %v264_v52, 2 }
 0x1b2   :  { %v266_v59 = vadd.f32 %v265_v54, %v264_v52 }
 0x1b4   :  { %273 = vadd.xlane.f32.xlu1 %v564_v51  ;;  %v267_v0 = vrot.slane %v266_v59, 1 }
 0x1b6   :  { %v268_v5 = vadd.f32 %v267_v0, %v266_v59 }
 0x1e1   :  { %s324_s2 = spop %323 }
 0x1e2   :  { %s284_s15 = smul.f32 2.0, %s324_s2 }
 0x21f   :  { %v212_v55 = vpop.xlane.xlu1 %211 }
 0x220   :  { %v213_v56 = vrot.slane %v212_v55, 4 }
 0x222   :  { %v214_v57 = vadd.f32 %v213_v56, %v212_v55 }
 0x224   :  { %v215_v60 = vrot.slane %v214_v57, 2 }
 0x226   :  { %v216_v61 = vadd.f32 %v215_v60, %v214_v57 }
 0x227   :  { %v274_v63 = vpop.xlane.xlu1 %273 }
 0x228   :  { %v275_v1 = vrot.slane %v274_v63, 4  ;;  %v217_v2 = vrot.slane %v216_v61, 1 }
 0x22a   :  { %v276_v51 = vadd.f32 %v275_v1, %v274_v63  ;;  %v218_v3 = vadd.f32 %v217_v2, %v216_v61 }
 0x22c   :  { %v277_v6 = vrot.slane %v276_v51, 2  ;;  %325 = vpush %v218_v3 }
 0x22d   :  { %327 = vpush %v268_v5 }
 0x22e   :  { %v278_v7 = vadd.f32 %v277_v6, %v276_v51 }
 0x230   :  { %v279_v9 = vrot.slane %v278_v7, 1 }
 0x232   :  { %v280_v10 = vadd.f32 %v279_v9, %v278_v7 }
 0x234   :  { %329 = vpush %v280_v10 }
 0x235   :  { %331 = vpush %v292_v11 }
 0x25d   :  { %s326_s3 = spop %325 }
 0x25e   :  { %s328_s12 = spop %327 }
 0x265   :  { %s330_s13 = spop %329 }
 0x266   :  { %s282_s14 = sadd.f32 %s330_s13, %s328_s12  ;;  %s332_s17 = spop %331 }
 0x268   :  { %s283_s16 = sadd.f32 %s326_s3, %s282_s14 }
 0x26a   :  { %s285_s20 = ssub.f32 %s283_s16, %s284_s15 }
 0x26c   :  { %s294_s24 = smul.f32 %s332_s17, %s285_s20 }
 0x26e   :  { %v295_v12 = vstv %s294_s24 }
 0x26f   :  { %297 = vst.msk [vmem:[#allocation11] sm:$0x1] %vm296_vm10, %v295_v12 }
 0x270   :  { %308 = dma.vmem_to_hbm [thread:$0]  %s304_s19, 16, %s306_s23, [#allocation5]  }
 0x271   :  { %491 = dma.done.wait [#allocation5], 16  }
 0x272   :  { %492 = vsyncadd [#allocation5], 4294967280 }
 0x273   :  { %313 = vsyncpa [#allocation4], 1 }
 0x274   :  { %314 = vsyncpa [#allocation7], 1 }
 0x275   :  { %315 = vsyncpa [#allocation10], 1 }
 0x276   :  { %316 = vsyncpa [#allocation5], 1 }

</bundles_post_ra>
